<compile_context>
chip_gen: v7x
topology: tpu7x:2x2x1
jax: 0.10.0
libtpu: 0.0.40
codegen_flags: <defaults>
</compile_context>

<pallas_src>
import jax
import jax.numpy as jnp
from jax.experimental import pallas as pl
from jax.experimental.pallas import tpu as pltpu

HIDDEN = 256


def _round_up(x, m):
    return ((x + m - 1) // m) * m


def _critic_kernel(sa_ref,
                   w1_ref, b1_ref, w2_ref, b2_ref, w3_ref, b3_ref,
                   w4_ref, b4_ref, w5_ref, b5_ref, w6_ref, b6_ref,
                   q1_ref, q2_ref):
    sa = sa_ref[...]                                    # (tile, sa_dim) bf16

    # ---- Q1 head ----
    h = jnp.dot(sa, w1_ref[...], preferred_element_type=jnp.float32)
    h = jnp.maximum(h + b1_ref[...], 0.0).astype(jnp.bfloat16)
    h = jnp.dot(h, w2_ref[...], preferred_element_type=jnp.float32)
    h = jnp.maximum(h + b2_ref[...], 0.0)               # f32 features
    q1 = jnp.sum(h * w3_ref[...], axis=-1, keepdims=True) + b3_ref[...]
    q1_ref[...] = q1.astype(q1_ref.dtype)

    # ---- Q2 head ----
    g = jnp.dot(sa, w4_ref[...], preferred_element_type=jnp.float32)
    g = jnp.maximum(g + b4_ref[...], 0.0).astype(jnp.bfloat16)
    g = jnp.dot(g, w5_ref[...], preferred_element_type=jnp.float32)
    g = jnp.maximum(g + b5_ref[...], 0.0)
    q2 = jnp.sum(g * w6_ref[...], axis=-1, keepdims=True) + b6_ref[...]
    q2_ref[...] = q2.astype(q2_ref.dtype)


def critic_forward(state, action, params, *, batch_tile=None):
    """Fused Pallas forward of Critic.forward(state, action) -> (q1, q2)."""
    w1, b1, w2, b2, w3, b3, w4, b4, w5, b5, w6, b6 = params
    B = state.shape[0]
    sa_dim = state.shape[1] + action.shape[1]

    # Concat once (single layer-1 matmul per head) and cast straight to bf16
    # for the MXU; accumulation stays fp32 inside the kernel.
    sa = jnp.concatenate([state, action], axis=1).astype(jnp.bfloat16)

    # Batch tiling: rows multiple of 8; >= 2 grid steps when the batch allows
    # so both v7x TensorCores get work; cap the tile to bound per-step VMEM.
    if batch_tile is None:
        if B <= 8:
            batch_tile = 8
        else:
            batch_tile = min(1024, max(8, _round_up(pl.cdiv(B, 2), 8)))

    grid_n = pl.cdiv(B, batch_tile)
    B_pad = grid_n * batch_tile
    if B_pad != B:
        sa = jnp.pad(sa, ((0, B_pad - B), (0, 0)))

    bf16 = lambda w: w.astype(jnp.bfloat16)
    f32 = lambda w: w.astype(jnp.float32)

    # Head weights as (1, HIDDEN) rows (VPU multiply + lane reduce in f32);
    # biases as (1, 1) resident blocks.
    w3r, w6r = f32(w3).reshape(1, HIDDEN), f32(w6).reshape(1, HIDDEN)
    b3s, b6s = f32(b3).reshape(1, 1), f32(b6).reshape(1, 1)

    const = lambda i: (0, 0)  # grid-invariant (VMEM-resident) operands

    q1, q2 = pl.pallas_call(
        _critic_kernel,
        out_shape=(jax.ShapeDtypeStruct((B_pad, 1), jnp.float32),
                   jax.ShapeDtypeStruct((B_pad, 1), jnp.float32)),
        grid_spec=pltpu.PrefetchScalarGridSpec(
            num_scalar_prefetch=0,
            grid=(grid_n,),
            in_specs=[
                pl.BlockSpec((batch_tile, sa_dim), lambda i: (i, 0)),
                # Q1 head params
                pl.BlockSpec((sa_dim, HIDDEN), const),
                pl.BlockSpec((1, HIDDEN), const),
                pl.BlockSpec((HIDDEN, HIDDEN), const),
                pl.BlockSpec((1, HIDDEN), const),
                pl.BlockSpec((1, HIDDEN), const),
                pl.BlockSpec((1, 1), const),
                # Q2 head params
                pl.BlockSpec((sa_dim, HIDDEN), const),
                pl.BlockSpec((1, HIDDEN), const),
                pl.BlockSpec((HIDDEN, HIDDEN), const),
                pl.BlockSpec((1, HIDDEN), const),
                pl.BlockSpec((1, HIDDEN), const),
                pl.BlockSpec((1, 1), const),
            ],
            out_specs=[
                pl.BlockSpec((batch_tile, 1), lambda i: (i, 0)),
                pl.BlockSpec((batch_tile, 1), lambda i: (i, 0)),
            ],
        ),
        compiler_params=pltpu.CompilerParams(
            dimension_semantics=("parallel",)),
    )(sa,
      bf16(w1), f32(b1), bf16(w2), f32(b2), w3r, b3s,
      bf16(w4), f32(b4), bf16(w5), f32(b5), w6r, b6s)

    return q1[:B], q2[:B]


def init_critic_params(key, state_dim, action_dim):
    """Init mimicking nn.Linear's U(-1/sqrt(fan_in), 1/sqrt(fan_in)).

    Weights are stored as (in_features, out_features) — i.e. PyTorch's W.T —
    so the kernel computes x @ W directly. Biases are kept 2-D (1, out).
    """
    sa_dim = state_dim + action_dim
    k = jax.random.split(key, 12)

    def uniform(kk, shape, fan_in):
        bound = 1.0 / jnp.sqrt(float(fan_in))
        return jax.random.uniform(kk, shape, jnp.float32, -bound, bound)

    w1 = uniform(k[0], (sa_dim, HIDDEN), sa_dim)
    b1 = uniform(k[1], (1, HIDDEN), sa_dim)
    w2 = uniform(k[2], (HIDDEN, HIDDEN), HIDDEN)
    b2 = uniform(k[3], (1, HIDDEN), HIDDEN)
    w3 = uniform(k[4], (HIDDEN, 1), HIDDEN)
    b3 = uniform(k[5], (1, 1), HIDDEN)
    w4 = uniform(k[6], (sa_dim, HIDDEN), sa_dim)
    b4 = uniform(k[7], (1, HIDDEN), sa_dim)
    w5 = uniform(k[8], (HIDDEN, HIDDEN), HIDDEN)
    b5 = uniform(k[9], (1, HIDDEN), HIDDEN)
    w6 = uniform(k[10], (HIDDEN, 1), HIDDEN)
    b6 = uniform(k[11], (1, 1), HIDDEN)
    return (w1, b1, w2, b2, w3, b3, w4, b4, w5, b5, w6, b6)


def critic_reference(state, action, params):
    w1, b1, w2, b2, w3, b3, w4, b4, w5, b5, w6, b6 = params
    sa = jnp.concatenate([state, action], axis=1)
    h = jnp.maximum(sa @ w1 + b1, 0.0)
    h = jnp.maximum(h @ w2 + b2, 0.0)
    q1 = h @ w3 + b3
    g = jnp.maximum(sa @ w4 + b4, 0.0)
    g = jnp.maximum(g @ w5 + b5, 0.0)
    q2 = g @ w6 + b6
    return q1, q2


if __name__ == "__main__":
    key = jax.random.PRNGKey(0)
    k_params, k_state, k_action = jax.random.split(key, 3)

    batch = 16
    state_dim = 32
    action_dim = 8

    params = init_critic_params(k_params, state_dim, action_dim)
    state = jax.random.normal(k_state, (batch, state_dim), jnp.float32)
    action = jax.random.normal(k_action, (batch, action_dim), jnp.float32)

    q1, q2 = critic_forward(state, action, params)
    q1, q2 = jax.block_until_ready((q1, q2))

    r1, r2 = critic_reference(state, action, params)
    assert q1.shape == (batch, 1) and q2.shape == (batch, 1)
    # bf16 matmul inputs (fp32 accumulation, f32 head) => relaxed tolerance.
    assert jnp.allclose(q1, r1, atol=3e-2, rtol=3e-2), "Q1 mismatch vs reference"
    assert jnp.allclose(q2, r2, atol=3e-2, rtol=3e-2), "Q2 mismatch vs reference"

    print("KERNEL_OK")
</pallas_src>

<mosaic_0001>
module attributes {stable_mosaic.version = 11 : i64} {
  func.func @_critic_kernel(%arg0: i32, %arg1: memref<8x40xbf16, #tpu.memory_space<vmem>>, %arg2: memref<40x256xbf16, #tpu.memory_space<vmem>>, %arg3: memref<1x256xf32, #tpu.memory_space<vmem>>, %arg4: memref<256x256xbf16, #tpu.memory_space<vmem>>, %arg5: memref<1x256xf32, #tpu.memory_space<vmem>>, %arg6: memref<1x256xf32, #tpu.memory_space<vmem>>, %arg7: memref<1x1xf32, #tpu.memory_space<vmem>>, %arg8: memref<40x256xbf16, #tpu.memory_space<vmem>>, %arg9: memref<1x256xf32, #tpu.memory_space<vmem>>, %arg10: memref<256x256xbf16, #tpu.memory_space<vmem>>, %arg11: memref<1x256xf32, #tpu.memory_space<vmem>>, %arg12: memref<1x256xf32, #tpu.memory_space<vmem>>, %arg13: memref<1x1xf32, #tpu.memory_space<vmem>>, %arg14: memref<8x1xf32, #tpu.memory_space<vmem>>, %arg15: memref<8x1xf32, #tpu.memory_space<vmem>>) attributes {dimension_semantics = [#tpu.dimension_semantics<parallel>], iteration_bounds = array<i64: 2>, scalar_prefetch = 0 : i64, scratch_operands = 0 : i64, tpu.core_type = #tpu.core_type<tc>, window_params = [{transform_indices = @transform_0, window_bounds = array<i64: 8, 40>}, {pipeline_mode = #tpu.pipeline_mode<synchronous>, transform_indices = @transform_1, window_bounds = array<i64: 40, 256>}, {pipeline_mode = #tpu.pipeline_mode<synchronous>, transform_indices = @transform_2, window_bounds = array<i64: 1, 256>}, {pipeline_mode = #tpu.pipeline_mode<synchronous>, transform_indices = @transform_3, window_bounds = array<i64: 256, 256>}, {pipeline_mode = #tpu.pipeline_mode<synchronous>, transform_indices = @transform_4, window_bounds = array<i64: 1, 256>}, {pipeline_mode = #tpu.pipeline_mode<synchronous>, transform_indices = @transform_5, window_bounds = array<i64: 1, 256>}, {pipeline_mode = #tpu.pipeline_mode<synchronous>, transform_indices = @transform_6, window_bounds = array<i64: 1, 1>}, {pipeline_mode = #tpu.pipeline_mode<synchronous>, transform_indices = @transform_7, window_bounds = array<i64: 40, 256>}, {pipeline_mode = #tpu.pipeline_mode<synchronous>, transform_indices = @transform_8, window_bounds = array<i64: 1, 256>}, {pipeline_mode = #tpu.pipeline_mode<synchronous>, transform_indices = @transform_9, window_bounds = array<i64: 256, 256>}, {pipeline_mode = #tpu.pipeline_mode<synchronous>, transform_indices = @transform_10, window_bounds = array<i64: 1, 256>}, {pipeline_mode = #tpu.pipeline_mode<synchronous>, transform_indices = @transform_11, window_bounds = array<i64: 1, 256>}, {pipeline_mode = #tpu.pipeline_mode<synchronous>, transform_indices = @transform_12, window_bounds = array<i64: 1, 1>}, {transform_indices = @transform_13, window_bounds = array<i64: 8, 1>}, {transform_indices = @transform_14, window_bounds = array<i64: 8, 1>}]} {
    %c0 = arith.constant 0 : index
    %c0_0 = arith.constant 0 : index
    %0 = vector.load %arg1[%c0, %c0_0] : memref<8x40xbf16, #tpu.memory_space<vmem>>, vector<8x40xbf16>
    %c0_1 = arith.constant 0 : index
    %c0_2 = arith.constant 0 : index
    %1 = vector.load %arg2[%c0_1, %c0_2] : memref<40x256xbf16, #tpu.memory_space<vmem>>, vector<40x256xbf16>
    %cst = arith.constant dense<0.000000e+00> : vector<8x256xf32>
    %2 = tpu.matmul %0, %1, %cst {dimension_numbers = #tpu.dot_dimension_numbers<[1], [0], [0], [1], [0, 0, 1, 1], [], []>} : vector<8x40xbf16>, vector<40x256xbf16>, vector<8x256xf32> -> vector<8x256xf32>
    %c0_3 = arith.constant 0 : index
    %c0_4 = arith.constant 0 : index
    %3 = vector.load %arg3[%c0_3, %c0_4] : memref<1x256xf32, #tpu.memory_space<vmem>>, vector<1x256xf32>
    %4 = vector.broadcast %3 : vector<1x256xf32> to vector<8x256xf32>
    %5 = arith.addf %2, %4 : vector<8x256xf32>
    %cst_5 = arith.constant 0.000000e+00 : f32
    %6 = vector.broadcast %cst_5 : f32 to vector<8x256xf32>
    %7 = arith.maximumf %5, %6 : vector<8x256xf32>
    %8 = arith.truncf %7 : vector<8x256xf32> to vector<8x256xbf16>
    %c0_6 = arith.constant 0 : index
    %c0_7 = arith.constant 0 : index
    %9 = vector.load %arg4[%c0_6, %c0_7] : memref<256x256xbf16, #tpu.memory_space<vmem>>, vector<256x256xbf16>
    %cst_8 = arith.constant dense<0.000000e+00> : vector<8x256xf32>
    %10 = tpu.matmul %8, %9, %cst_8 {dimension_numbers = #tpu.dot_dimension_numbers<[1], [0], [0], [1], [0, 0, 1, 1], [], []>} : vector<8x256xbf16>, vector<256x256xbf16>, vector<8x256xf32> -> vector<8x256xf32>
    %c0_9 = arith.constant 0 : index
    %c0_10 = arith.constant 0 : index
    %11 = vector.load %arg5[%c0_9, %c0_10] : memref<1x256xf32, #tpu.memory_space<vmem>>, vector<1x256xf32>
    %12 = vector.broadcast %11 : vector<1x256xf32> to vector<8x256xf32>
    %13 = arith.addf %10, %12 : vector<8x256xf32>
    %cst_11 = arith.constant 0.000000e+00 : f32
    %14 = vector.broadcast %cst_11 : f32 to vector<8x256xf32>
    %15 = arith.maximumf %13, %14 : vector<8x256xf32>
    %c0_12 = arith.constant 0 : index
    %c0_13 = arith.constant 0 : index
    %16 = vector.load %arg6[%c0_12, %c0_13] : memref<1x256xf32, #tpu.memory_space<vmem>>, vector<1x256xf32>
    %17 = vector.broadcast %16 : vector<1x256xf32> to vector<8x256xf32>
    %18 = arith.mulf %15, %17 : vector<8x256xf32>
    %cst_14 = arith.constant dense<0.000000e+00> : vector<8xf32>
    %19 = vector.multi_reduction <add>, %18, %cst_14 [1] : vector<8x256xf32> to vector<8xf32>
    %20 = vector.shape_cast %19 : vector<8xf32> to vector<8x1xf32>
    %c0_15 = arith.constant 0 : index
    %c0_16 = arith.constant 0 : index
    %21 = vector.load %arg7[%c0_15, %c0_16] : memref<1x1xf32, #tpu.memory_space<vmem>>, vector<1x1xf32>
    %22 = vector.broadcast %21 : vector<1x1xf32> to vector<8x1xf32>
    %23 = arith.addf %20, %22 : vector<8x1xf32>
    %c0_17 = arith.constant 0 : index
    %c0_18 = arith.constant 0 : index
    %24 = vector.load %arg14[%c0_17, %c0_18] : memref<8x1xf32, #tpu.memory_space<vmem>>, vector<8x1xf32>
    tpu.vector_store %arg14[%c0_17, %c0_18], %23 {strides = array<i32>} : memref<8x1xf32, #tpu.memory_space<vmem>>, vector<8x1xf32>,
    %c0_19 = arith.constant 0 : index
    %c0_20 = arith.constant 0 : index
    %25 = vector.load %arg8[%c0_19, %c0_20] : memref<40x256xbf16, #tpu.memory_space<vmem>>, vector<40x256xbf16>
    %cst_21 = arith.constant dense<0.000000e+00> : vector<8x256xf32>
    %26 = tpu.matmul %0, %25, %cst_21 {dimension_numbers = #tpu.dot_dimension_numbers<[1], [0], [0], [1], [0, 0, 1, 1], [], []>} : vector<8x40xbf16>, vector<40x256xbf16>, vector<8x256xf32> -> vector<8x256xf32>
    %c0_22 = arith.constant 0 : index
    %c0_23 = arith.constant 0 : index
    %27 = vector.load %arg9[%c0_22, %c0_23] : memref<1x256xf32, #tpu.memory_space<vmem>>, vector<1x256xf32>
    %28 = vector.broadcast %27 : vector<1x256xf32> to vector<8x256xf32>
    %29 = arith.addf %26, %28 : vector<8x256xf32>
    %cst_24 = arith.constant 0.000000e+00 : f32
    %30 = vector.broadcast %cst_24 : f32 to vector<8x256xf32>
    %31 = arith.maximumf %29, %30 : vector<8x256xf32>
    %32 = arith.truncf %31 : vector<8x256xf32> to vector<8x256xbf16>
    %c0_25 = arith.constant 0 : index
    %c0_26 = arith.constant 0 : index
    %33 = vector.load %arg10[%c0_25, %c0_26] : memref<256x256xbf16, #tpu.memory_space<vmem>>, vector<256x256xbf16>
    %cst_27 = arith.constant dense<0.000000e+00> : vector<8x256xf32>
    %34 = tpu.matmul %32, %33, %cst_27 {dimension_numbers = #tpu.dot_dimension_numbers<[1], [0], [0], [1], [0, 0, 1, 1], [], []>} : vector<8x256xbf16>, vector<256x256xbf16>, vector<8x256xf32> -> vector<8x256xf32>
    %c0_28 = arith.constant 0 : index
    %c0_29 = arith.constant 0 : index
    %35 = vector.load %arg11[%c0_28, %c0_29] : memref<1x256xf32, #tpu.memory_space<vmem>>, vector<1x256xf32>
    %36 = vector.broadcast %35 : vector<1x256xf32> to vector<8x256xf32>
    %37 = arith.addf %34, %36 : vector<8x256xf32>
    %cst_30 = arith.constant 0.000000e+00 : f32
    %38 = vector.broadcast %cst_30 : f32 to vector<8x256xf32>
    %39 = arith.maximumf %37, %38 : vector<8x256xf32>
    %c0_31 = arith.constant 0 : index
    %c0_32 = arith.constant 0 : index
    %40 = vector.load %arg12[%c0_31, %c0_32] : memref<1x256xf32, #tpu.memory_space<vmem>>, vector<1x256xf32>
    %41 = vector.broadcast %40 : vector<1x256xf32> to vector<8x256xf32>
    %42 = arith.mulf %39, %41 : vector<8x256xf32>
    %cst_33 = arith.constant dense<0.000000e+00> : vector<8xf32>
    %43 = vector.multi_reduction <add>, %42, %cst_33 [1] : vector<8x256xf32> to vector<8xf32>
    %44 = vector.shape_cast %43 : vector<8xf32> to vector<8x1xf32>
    %c0_34 = arith.constant 0 : index
    %c0_35 = arith.constant 0 : index
    %45 = vector.load %arg13[%c0_34, %c0_35] : memref<1x1xf32, #tpu.memory_space<vmem>>, vector<1x1xf32>
    %46 = vector.broadcast %45 : vector<1x1xf32> to vector<8x1xf32>
    %47 = arith.addf %44, %46 : vector<8x1xf32>
    %c0_36 = arith.constant 0 : index
    %c0_37 = arith.constant 0 : index
    %48 = vector.load %arg15[%c0_36, %c0_37] : memref<8x1xf32, #tpu.memory_space<vmem>>, vector<8x1xf32>
    tpu.vector_store %arg15[%c0_36, %c0_37], %47 {strides = array<i32>} : memref<8x1xf32, #tpu.memory_space<vmem>>, vector<8x1xf32>,
    return
  }
  func.func @transform_0(%arg0: i32) -> (i32, i32) {
    %c0_i32 = arith.constant 0 : i32
    %c0_i32_0 = arith.constant 0 : i32
    return %arg0, %c0_i32 : i32, i32
  }
  func.func @transform_1(%arg0: i32) -> (i32, i32) {
    %c0_i32 = arith.constant 0 : i32
    %c0_i32_0 = arith.constant 0 : i32
    %c0_i32_1 = arith.constant 0 : i32
    return %c0_i32, %c0_i32_0 : i32, i32
  }
  func.func @transform_2(%arg0: i32) -> (i32, i32) {
    %c0_i32 = arith.constant 0 : i32
    %c0_i32_0 = arith.constant 0 : i32
    %c0_i32_1 = arith.constant 0 : i32
    return %c0_i32, %c0_i32_0 : i32, i32
  }
  func.func @transform_3(%arg0: i32) -> (i32, i32) {
    %c0_i32 = arith.constant 0 : i32
    %c0_i32_0 = arith.constant 0 : i32
    %c0_i32_1 = arith.constant 0 : i32
    return %c0_i32, %c0_i32_0 : i32, i32
  }
  func.func @transform_4(%arg0: i32) -> (i32, i32) {
    %c0_i32 = arith.constant 0 : i32
    %c0_i32_0 = arith.constant 0 : i32
    %c0_i32_1 = arith.constant 0 : i32
    return %c0_i32, %c0_i32_0 : i32, i32
  }
  func.func @transform_5(%arg0: i32) -> (i32, i32) {
    %c0_i32 = arith.constant 0 : i32
    %c0_i32_0 = arith.constant 0 : i32
    %c0_i32_1 = arith.constant 0 : i32
    return %c0_i32, %c0_i32_0 : i32, i32
  }
  func.func @transform_6(%arg0: i32) -> (i32, i32) {
    %c0_i32 = arith.constant 0 : i32
    %c0_i32_0 = arith.constant 0 : i32
    %c0_i32_1 = arith.constant 0 : i32
    return %c0_i32, %c0_i32_0 : i32, i32
  }
  func.func @transform_7(%arg0: i32) -> (i32, i32) {
    %c0_i32 = arith.constant 0 : i32
    %c0_i32_0 = arith.constant 0 : i32
    %c0_i32_1 = arith.constant 0 : i32
    return %c0_i32, %c0_i32_0 : i32, i32
  }
  func.func @transform_8(%arg0: i32) -> (i32, i32) {
    %c0_i32 = arith.constant 0 : i32
    %c0_i32_0 = arith.constant 0 : i32
    %c0_i32_1 = arith.constant 0 : i32
    return %c0_i32, %c0_i32_0 : i32, i32
  }
  func.func @transform_9(%arg0: i32) -> (i32, i32) {
    %c0_i32 = arith.constant 0 : i32
    %c0_i32_0 = arith.constant 0 : i32
    %c0_i32_1 = arith.constant 0 : i32
    return %c0_i32, %c0_i32_0 : i32, i32
  }
  func.func @transform_10(%arg0: i32) -> (i32, i32) {
    %c0_i32 = arith.constant 0 : i32
    %c0_i32_0 = arith.constant 0 : i32
    %c0_i32_1 = arith.constant 0 : i32
    return %c0_i32, %c0_i32_0 : i32, i32
  }
  func.func @transform_11(%arg0: i32) -> (i32, i32) {
    %c0_i32 = arith.constant 0 : i32
    %c0_i32_0 = arith.constant 0 : i32
    %c0_i32_1 = arith.constant 0 : i32
    return %c0_i32, %c0_i32_0 : i32, i32
  }
  func.func @transform_12(%arg0: i32) -> (i32, i32) {
    %c0_i32 = arith.constant 0 : i32
    %c0_i32_0 = arith.constant 0 : i32
    %c0_i32_1 = arith.constant 0 : i32
    return %c0_i32, %c0_i32_0 : i32, i32
  }
  func.func @transform_13(%arg0: i32) -> (i32, i32) {
    %c0_i32 = arith.constant 0 : i32
    %c0_i32_0 = arith.constant 0 : i32
    return %arg0, %c0_i32 : i32, i32
  }
  func.func @transform_14(%arg0: i32) -> (i32, i32) {
    %c0_i32 = arith.constant 0 : i32
    %c0_i32_0 = arith.constant 0 : i32
    return %arg0, %c0_i32 : i32, i32
  }
}

</mosaic_0001>

<bundles_post_ra>
// kernel: tpu_custom_call.1
= control target key start
LH: loop header
LB: loop body
LE: loop exit
PB: predicated region body
PF: predicated region fallthrough
CT: control target
= control target key end

     0   :  { %s2268_s0 = inlined_call_operand.hbm [shape: bf16[16,40], index: 0, kind: input, shape index: {}]   ;;  %s2269_s1 = inlined_call_operand.hbm [shape: bf16[40,256], index: 1, kind: input, shape index: {}]   ;;  %s2270_s2 = inlined_call_operand.vmem [shape: f32[1,256], index: 2, kind: input, shape index: {}]   ;;  %s2271_s3 = inlined_call_operand.hbm [shape: bf16[256,256], index: 3, kind: input, shape index: {}]   ;;  %s2272_s4 = inlined_call_operand.vmem [shape: f32[1,256], index: 4, kind: input, shape index: {}]   ;;  %s2273_s5 = inlined_call_operand.vmem [shape: f32[1,256], index: 5, kind: input, shape index: {}]   ;;  %s2274_s6 = inlined_call_operand.<no memory space> [shape: f32[1,1], index: 6, kind: input, shape index: {}]   ;;  %s2275_s7 = inlined_call_operand.hbm [shape: bf16[40,256], index: 7, kind: input, shape index: {}]   ;;  %s2276_s8 = inlined_call_operand.vmem [shape: f32[1,256], index: 8, kind: input, shape index: {}]   ;;  %s2277_s9 = inlined_call_operand.hbm [shape: bf16[256,256], index: 9, kind: input, shape index: {}]   ;;  %s2278_s10 = inlined_call_operand.vmem [shape: f32[1,256], index: 10, kind: input, shape index: {}]   ;;  %s2279_s11 = inlined_call_operand.vmem [shape: f32[1,256], index: 11, kind: input, shape index: {}]   ;;  %s2280_s13 = inlined_call_operand.vmem [shape: f32[16,1], index: 13, kind: output, shape index: {0}]   ;;  %s2281_s14 = inlined_call_operand.vmem [shape: f32[16,1], index: 14, kind: output, shape index: {1}]   ;;  %s2282_s12 = inlined_call_operand.<no memory space> [shape: f32[1,1], index: 12, kind: input, shape index: {}]  }
   0x1   :  { %2285 = sst [smem:[#allocation15_spill]] %s2273_s5  ;;  %v20_v0 = vstv %s2274_s6  ;;  %v22_v1 = vstv %s2282_s12 }
   0x2   :  { %2286 = sst [smem:[#allocation16_spill]] %s2279_s11  ;;  %21 = vst [vmem:[#allocation2] sm:$0x1] %v20_v0  ;;  %23 = vst [vmem:[#allocation3] sm:$0x1] %v22_v1 }
   0x3   :  { %2287 = sst [smem:[#allocation17_spill]] %s2280_s13 }
   0x4   :  { %2288 = sst [smem:[#allocation18_spill]] %s2281_s14 }
   0x5   :  { %24 = vsyncpa [#allocation5], 0 }
   0x6   :  { %26 = vsyncpa [#allocation5 + $0x1], 0 }
   0x7   :  { %27 = vsyncpa [#allocation7], 0 }
   0x8   :  { %28 = vsyncpa [#allocation10], 0  ;;  %s2001_s17 = smov 0   ;;  %s2003_s18 = smov 0  }
   0x9   :  { %s2005_s19 = smov 0   ;;  %s2007_s20 = smov 0  }
   0xa LB: > { %s1912_s6 = smov [#allocation6]   ;;  %s2022_s21 = sadd.s32 4294967295, %s1910_s20   ;;  %s1910_s20 = sphi %s2007_s20, %s2307_s20   ;;  %s1906_s19 = sphi %s2005_s19, %s2306_s19   ;;  %s1902_s18 = sphi %s2003_s18, %s2305_s18   ;;  %s1898_s17 = sphi %s2001_s17, %s2304_s17  }
   0xb   : > { %s381_s12 = sshll.u32 %s1912_s6, 4  ;;  %p1431_p0 = scmp.ge.s32.totalorder %s1910_s20, 1  ;;  %s2027_s12 = int_to_ptr.vmem [resolvable:$true] %s381_s12 }
   0xc   : > { %p2283_p1 = scmp.eq.s32.totalorder %s2022_s21, 0  ;;  %p369_p2 = scmp.lt.s32.totalorder %s1910_s20, 3 }
   0xd   : > { %s1913_s23 = smov [#allocation9]   ;;  %s1914_s26 = smov [#allocation8]  }
   0xe   : > { %p2029_p3 = pnand %p1431_p0, %p369_p2  ;;  %s419_s24 = sshll.u32 %s1913_s23, 4  ;;  %s2041_s24 = int_to_ptr.vmem [resolvable:$true] %s419_s24 }
   0xf   : > { %s397_s27 = sshll.u32 %s1914_s26, 4  ;;  %s1726_s30 = scalar_lea.hbm %s2269_s1, 640  ;;  %s2043_s27 = int_to_ptr.vmem [resolvable:$true] %s397_s27 }
  0x10   : > { %s2289_s22 = scalar_select %p2029_p3, 1, 0 }
  0x11   : > { %p1549_p4 = pneg %p2029_p3  ;;  %p1727_p6 = scmp.ne.s32.totalorder %s2269_s1, %s1726_s30 }
  0x12   : > { %p1733_p10 = scmp.lt.u32.totalorder %s1726_s30, %s2269_s1 }
  0x13   : > { %p2037_p5 = pnand %p1549_p4, %p2283_p1 }
  0x15   : > { %p2053_p7 = pneg %p2037_p5 }
  0x17   : > { %p1729_p8 = pnand %p2053_p7, %p1727_p6 }
  0x19   : > { %p1730_p9 = pneg %p1729_p8 }
  0x1b   : > { %p1735_p11 = pnand %p1733_p10, %p1730_p9 }
  0x1d   : > { %1738 = shalt.err (!%p1735_p11)
}
  0x1e   : > { %s1739_s28 = scalar_lea.vmem %s2027_s12, 640  ;;  %p1747_p2 = scmp.lt.s32.totalorder %s2027_s12, %s2027_s12 }
  0x1f   : > { %p1740_p12 = scmp.ne.s32.totalorder %s2027_s12, %s1739_s28  ;;  %p1748_p4 = scmp.lt.s32.totalorder %s1739_s28, %s1739_s28 }
  0x21   : > { %p1742_p13 = pnand %p1740_p12, %p2053_p7  ;;  %p1749_p6 = por %p1748_p4, %p1747_p2 }
  0x23   : > { %p1743_p0 = pneg %p1742_p13 }
  0x25   : > { %p1750_p8 = pnand %p1749_p6, %p1743_p0 }
  0x27   : > { %1753 = shalt.err (!%p1750_p8)
}
  0x28   : > { %s1915_s29 = smov 128   ;;  %s1916_s30 = smov 8  }
  0x29   : > { %1552 = dma.hbm_to_vmem [thread:$0]  (!%p2037_p5), %s2269_s1, 640, %s2027_s12, [#allocation7], %s1915_s29, %s1915_s29, %s1916_s30  }
  0x2a   : > { %s1754_s28 = scalar_lea.hbm %s2275_s7, 640 }
  0x2b   : > { %p1755_p9 = scmp.ne.s32.totalorder %s2275_s7, %s1754_s28  ;;  %p1761_p12 = scmp.lt.u32.totalorder %s1754_s28, %s2275_s7 }
  0x2d   : > { %p1757_p10 = pnand %p1755_p9, %p2053_p7 }
  0x2f   : > { %p1758_p11 = pneg %p1757_p10 }
  0x31   : > { %p1763_p13 = pnand %p1761_p12, %p1758_p11 }
  0x33   : > { %1766 = shalt.err (!%p1763_p13)
}
  0x34   : > { %s1767_s12 = scalar_lea.vmem %s2041_s24, 640  ;;  %p1775_p6 = scmp.lt.s32.totalorder %s2041_s24, %s2041_s24 }
  0x35   : > { %p1768_p0 = scmp.ne.s32.totalorder %s2041_s24, %s1767_s12  ;;  %p1776_p8 = scmp.lt.s32.totalorder %s1767_s12, %s1767_s12 }
  0x37   : > { %p1770_p2 = pnand %p1768_p0, %p2053_p7  ;;  %p1777_p9 = por %p1776_p8, %p1775_p6 }
  0x39   : > { %p1771_p4 = pneg %p1770_p2 }
  0x3b   : > { %p1778_p10 = pnand %p1777_p9, %p1771_p4 }
  0x3d   : > { %1781 = shalt.err (!%p1778_p10)
}
  0x3e   : > { %1558 = dma.hbm_to_vmem [thread:$0]  (!%p2037_p5), %s2275_s7, 640, %s2041_s24, [#allocation10], %s1915_s29, %s1915_s29, %s1916_s30  }
  0x3f   : > { %s1782_s15 = scalar_lea.hbm %s2271_s3, 4096 }
  0x40   : > { %p1783_p11 = scmp.ne.s32.totalorder %s2271_s3, %s1782_s15  ;;  %p1789_p0 = scmp.lt.u32.totalorder %s1782_s15, %s2271_s3 }
  0x42   : > { %p1785_p12 = pnand %p1783_p11, %p2053_p7 }
  0x44   : > { %p1786_p13 = pneg %p1785_p12 }
  0x46   : > { %p1791_p2 = pnand %p1789_p0, %p1786_p13 }
  0x48   : > { %1794 = shalt.err (!%p1791_p2)
}
  0x49   : > { %s1795_s24 = scalar_lea.vmem %s2043_s27, 4096  ;;  %p1803_p9 = scmp.lt.s32.totalorder %s2043_s27, %s2043_s27 }
  0x4a   : > { %p1796_p4 = scmp.ne.s32.totalorder %s2043_s27, %s1795_s24  ;;  %p1804_p10 = scmp.lt.s32.totalorder %s1795_s24, %s1795_s24 }
  0x4c   : > { %p1798_p6 = pnand %p1796_p4, %p2053_p7  ;;  %p1805_p11 = por %p1804_p10, %p1803_p9 }
  0x4e   : > { %p1799_p8 = pneg %p1798_p6 }
  0x50   : > { %p1806_p12 = pnand %p1805_p11, %p1799_p8 }
  0x52   : > { %1809 = shalt.err (!%p1806_p12)
}
  0x53   : > { %1555 = dma.hbm_to_vmem [thread:$0]  (!%p2037_p5), %s2271_s3, 4096, %s2043_s27, [#allocation7], %s1915_s29, %s1915_s29, %s1916_s30  }
  0x54   : > { %s1917_s11 = smov [#allocation11]   ;;  %s1810_s16 = scalar_lea.hbm %s2277_s9, 4096 }
  0x55   : > { %s435_s13 = sshll.u32 %s1917_s11, 4  ;;  %p1811_p13 = scmp.ne.s32.totalorder %s2277_s9, %s1810_s16  ;;  %s436_s13 = int_to_ptr.vmem [resolvable:$true] %s435_s13 }
  0x56   : > { %p1817_p4 = scmp.lt.u32.totalorder %s1810_s16, %s2277_s9 }
  0x57   : > { %p1813_p0 = pnand %p1811_p13, %p2053_p7 }
  0x59   : > { %p1814_p2 = pneg %p1813_p0 }
  0x5b   : > { %p1819_p6 = pnand %p1817_p4, %p1814_p2 }
  0x5d   : > { %1822 = shalt.err (!%p1819_p6)
}
  0x5e   : > { %s1823_s27 = scalar_lea.vmem %s436_s13, 4096  ;;  %p1831_p11 = scmp.lt.s32.totalorder %s436_s13, %s436_s13 }
  0x5f   : > { %p1824_p8 = scmp.ne.s32.totalorder %s436_s13, %s1823_s27  ;;  %p1832_p12 = scmp.lt.s32.totalorder %s1823_s27, %s1823_s27 }
  0x61   : > { %p1826_p9 = pnand %p1824_p8, %p2053_p7  ;;  %p1833_p1 = por %p1832_p12, %p1831_p11 }
  0x63   : > { %p1827_p10 = pneg %p1826_p9 }
  0x65   : > { %p1834_p3 = pnand %p1833_p1, %p1827_p10 }
  0x67   : > { %1837 = shalt.err (!%p1834_p3)
}
  0x68   : > { %1561 = dma.hbm_to_vmem [thread:$0]  (!%p2037_p5), %s2277_s9, 4096, %s436_s13, [#allocation10], %s1915_s29, %s1915_s29, %s1916_s30  }
  0x69   : > { %s2151_s25 = sadd.s32 1, %s1910_s20   ;;  %s41_s6 = sadd.s32 1, %s1906_s19 }
  0x6a   : > { %s38_s11 = ssub.s32 %s1910_s20, %s2151_s25  ;;  %p48_p1 = scmp.ne.s32.totalorder %s1906_s19, %s1902_s18 }
  0x6b   : > { %p39_p3 = scmp.eq.s32.totalorder %s38_s11, 0  ;;  %p49_p7 = scmp.eq.s32.totalorder %s1910_s20, 0 }
  0x6c   : > { %p54_p13 = scmp.ne.s32.totalorder %s1902_s18, %s1898_s17  ;;  %p1570_p0 = scmp.lt.s32.totalorder %s1910_s20, 2 }
  0x6d   : > { %s2163_s14 = scalar_select %p39_p3, %s1906_s19, %s41_s6  }
  0x6e   : > { %p50_p2 = por %p49_p7, %p48_p1  ;;  %p2292_p4 = scmp.eq.s32.totalorder %s2022_s21, 0 }
  0x6f   : > { %s458_s16 = sand.u32 1, %s1906_s19   ;;  %s1438_s29 = sshll.u32 %s1910_s20, 6 }
  0x70   : > { %p2167_p6 = por %p2292_p4, %p54_p13  ;;  %s1437_s30 = sshll.u32 %s458_s16, 2 }
  0x71   : > { %s2176_s26 = scalar_lea.hbm %s2268_s0, %s1438_s29  ;;  %s462_s17 = scalar_lea.vmem [#allocation4], %s1437_s30 }
  0x72   : > { %s469_s28 = sshll.u32 %s462_s17, 4  ;;  %p2178_p5 = pnand %p1570_p0, %p50_p2  ;;  %s2182_s28 = int_to_ptr.vmem [resolvable:$true] %s469_s28 }
  0x73   : > { %s459_s20 = scalar_lea.sflag [#allocation5], %s458_s16  ;;  %s1838_s27 = scalar_lea.hbm %s2176_s26, 64 }
  0x74   : > { %p1839_p8 = scmp.ne.s32.totalorder %s2176_s26, %s1838_s27  ;;  %p1840_p9 = pneg %p2178_p5 }
  0x75   : > { %s1843_s6 = scalar_lea.hbm %s2268_s0, 128  ;;  %p1844_p12 = scmp.lt.u32.totalorder %s2176_s26, %s2268_s0 }
  0x76   : > { %p1841_p10 = pnand %p1840_p9, %p1839_p8  ;;  %p1845_p1 = scmp.lt.u32.totalorder %s1843_s6, %s1838_s27 }
  0x77   : > { %p1847_p7 = scmp.lt.u32.totalorder %s1838_s27, %s2176_s26 }
  0x78   : > { %p1842_p11 = pneg %p1841_p10  ;;  %p1846_p3 = por %p1845_p1, %p1844_p12 }
  0x7a   : > { %p1848_p13 = por %p1847_p7, %p1846_p3 }
  0x7c   : > { %p1849_p0 = pnand %p1848_p13, %p1842_p11 }
  0x7e   : > { %1852 = shalt.err (!%p1849_p0)
}
  0x7f   : > { %s1853_s16 = scalar_lea.vmem %s2182_s28, 64  ;;  %s1918_s30 = smov [#allocation4]  }
  0x80   : > { %p1854_p2 = scmp.ne.s32.totalorder %s2182_s28, %s1853_s16  ;;  %s1858_s13 = sshll.u32 %s1918_s30, 4  ;;  %s1859_s13 = int_to_ptr.vmem [resolvable:$false] %s1858_s13 }
  0x81   : > { %s1860_s23 = scalar_lea.vmem %s1859_s13, 128  ;;  %p1861_p10 = scmp.lt.s32.totalorder %s2182_s28, %s1859_s13 }
  0x82   : > { %p1856_p4 = pnand %p1854_p2, %p1840_p9  ;;  %p1862_p12 = scmp.lt.s32.totalorder %s1860_s23, %s1853_s16 }
  0x84   : > { %p1857_p8 = pneg %p1856_p4  ;;  %p1863_p1 = por %p1862_p12, %p1861_p10 }
  0x86   : > { %p1864_p3 = pnand %p1863_p1, %p1857_p8 }
  0x88   : > { %1867 = shalt.err (!%p1864_p3)
}
  0x89   : > { %1565 = dma.hbm_to_vmem [thread:$0]  (!%p2178_p5), %s2176_s26, 64, %s2182_s28, %s459_s20  }
  0x8a   : > { %p2295_p11 = scmp.ne.s32.totalorder %s2289_s22, 0 }
  0x8b   : > { %s480_s17 = sand.u32 (!%p2295_p11), 1, %s1902_s18  }
  0x8c   : > { %478 = sbr.rel (%p2295_p11) target bundleno = 759 (0x2f7), region = 72  ;;  %s2212_s27 = sshll.u32 (!%p2295_p11), %s480_s17, 2 }
  0x8d   : > { %s481_s12 = scalar_lea.sflag (!%p2295_p11), [#allocation5], %s480_s17  ;;  %s484_s5 = scalar_lea.vmem (!%p2295_p11), [#allocation4], %s2212_s27 }
  0x93   : > { %1885 = dma.done.wait (%p2167_p6), %s481_s12, 64  }
  0x94   : > { %1887 = vsyncadd (%p2167_p6), %s481_s12, 4294967232  ;;  %p2296_p9 = scmp.eq.s32.totalorder %s2022_s21, 0 }
  0x96   : > { %1889 = dma.done.wait (%p2296_p9), [#allocation7], 4736   ;;  %p2297_p5 = pmov %p2296_p9 }
  0x98   : > { %1891 = vsyncadd (%p2297_p5), [#allocation7], 4294962560  ;;  %p2298_p7 = pmov %p2297_p5 }
  0x99   : > { %p2299_p13 = pmov %p2297_p5 }
  0x9a   : > { %1893 = dma.done.wait (%p2298_p7), [#allocation10], 4736  }
  0x9b   : > { %1895 = vsyncadd (%p2299_p13), [#allocation10], 4294962560  ;;  %v1919_v2 = vmov 0   ;;  %v1614_v3 = vld [vmem:[#allocation6 + $0x4] ss:$8 sps:$4 sm:$0xff]   ;;  %vm604_vm0 = vcmask 1043456  }
  0x9c   : > { %643 = vmatprep.mubr.bf16.mxu1 %v1919_v2  ;;  %1010 = vmatprep.mubr.bf16.mxu0 %v1919_v2  ;;  %v1616_v4 = vld [vmem:[#allocation9 + $0x4] ss:$8 sps:$4 sm:$0xff]   ;;  %v1618_v5 = vld [vmem:[#allocation6] ss:$8 sps:$4 sm:$0xff]   ;;  %v1622_v8 = vld [vmem:[#allocation9 + $0x14] ss:$8 sps:$4 sm:$0xff]  }
  0x9d   : > { %611 = vmatprep.subr.bf16.mxu1 %v1614_v3  ;;  %v1619_v6 = vld [vmem:[#allocation9] ss:$8 sps:$4 sm:$0xff]   ;;  %978 = vmatprep.subr.bf16.mxu0 %v1616_v4  ;;  %v1620_v7 = vld [vmem:[#allocation6 + $0x14] ss:$8 sps:$4 sm:$0xff]   ;;  %v1625_v10 = vld [vmem:[#allocation9 + $0x10] ss:$8 sps:$4 sm:$0xff]  }
  0x9e   : > { %612 = vmatpush1.bf16.msra.mxu1 %v1618_v5  ;;  %979 = vmatpush1.bf16.msra.mxu0 %v1619_v6  ;;  %v1624_v9 = vld [vmem:[#allocation6 + $0x10] ss:$8 sps:$4 sm:$0xff]   ;;  %v562_v11 = vld [vmem:[#allocation6 + $0x20] sm:$0xff]  ;;  %v934_v12 = vld [vmem:[#allocation9 + $0x20] sm:$0xff]  ;;  %vm600_vm1 = vcmask 326656   ;;  %s2300_s30 = sld [smem:[#allocation16_spill]] }
  0x9f   : > { %613 = vmatprep.subr.bf16.mxu1 %v1620_v7  ;;  %980 = vmatprep.subr.bf16.mxu0 %v1622_v8  ;;  %v1452_v13 = vcombine.high %v562_v11, %v562_v11  ;;  %v1493_v14 = vcombine.high %v934_v12, %v934_v12  ;;  %v1451_v15 = vcombine.low %v562_v11, %v562_v11  ;;  %v1632_v17 = vld [vmem:[#allocation8 + $0x4] ss:$8 sps:$4 sm:$0xff]   ;;  %v557_v21 = vld [vmem:[%s484_s5] sm:$0xf]  ;;  %v1630_v22 = vld [vmem:[#allocation8] ss:$8 sps:$4 sm:$0xff]  }
  0xa0   : > { %v1492_v16 = vcombine.low %v934_v12, %v934_v12  ;;  %v1635_v20 = vld [vmem:[#allocation11 + $0x4] ss:$8 sps:$4 sm:$0xff]   ;;  %v1633_v23 = vld [vmem:[#allocation11] ss:$8 sps:$4 sm:$0xff]   ;;  %v1641_v25 = vld [vmem:[#allocation11 + $0x14] ss:$8 sps:$4 sm:$0xff]  }
  0xa1   : > { %v606_v18 = vsel %vm604_vm0, %v1451_v15, 0  ;;  %v1638_v24 = vld [vmem:[#allocation8 + $0x14] ss:$8 sps:$4 sm:$0xff]   ;;  %v1636_v26 = vld [vmem:[#allocation8 + $0x10] ss:$8 sps:$4 sm:$0xff]   ;;  %s2301_s17 = sld [smem:[#allocation15_spill]] }
  0xa2   : > { %614 = vmatpush1.bf16.msra.mxu1 %v1624_v9  ;;  %981 = vmatpush1.bf16.msra.mxu0 %v1625_v10  ;;  %v973_v19 = vsel %vm604_vm0, %v1492_v16, 0  ;;  %v1639_v27 = vld [vmem:[#allocation11 + $0x10] ss:$8 sps:$4 sm:$0xff]   ;;  %v1644_v28 = vld [vmem:[#allocation8 + $0x24] ss:$8 sps:$4 sm:$0xff]   ;;  %p548_p6 = scmp.lt.s32.totalorder %s2022_s21, 1 }
  0xa3   : > { %1453 = vmatprep.subr.msk.bf16.mxu1 %vm604_vm0, %v1452_v13  ;;  %1494 = vmatprep.subr.msk.bf16.mxu0 %vm604_vm0, %v1493_v14  ;;  %v1647_v29 = vld [vmem:[#allocation11 + $0x24] ss:$8 sps:$4 sm:$0xff]   ;;  %v1642_v30 = vld [vmem:[#allocation8 + $0x20] ss:$8 sps:$4 sm:$0xff]   ;;  %v1653_v33 = vld [vmem:[#allocation11 + $0x34] ss:$8 sps:$4 sm:$0xff]  }
  0xa4   : > { %v1645_v31 = vld [vmem:[#allocation11 + $0x20] ss:$8 sps:$4 sm:$0xff]   ;;  %v1650_v32 = vld [vmem:[#allocation8 + $0x34] ss:$8 sps:$4 sm:$0xff]   ;;  %v1651_v35 = vld [vmem:[#allocation11 + $0x30] ss:$8 sps:$4 sm:$0xff]  }
  0xa5   : > { %v1648_v34 = vld [vmem:[#allocation8 + $0x30] ss:$8 sps:$4 sm:$0xff]   ;;  %v1656_v36 = vld [vmem:[#allocation8 + $0x44] ss:$8 sps:$4 sm:$0xff]   ;;  %v1654_v38 = vld [vmem:[#allocation8 + $0x40] ss:$8 sps:$4 sm:$0xff]  }
  0xa6   : > { %616 = vmatpush1.bf16.msra.mxu1 %v606_v18  ;;  %983 = vmatpush1.bf16.msra.mxu0 %v973_v19  ;;  %v1659_v37 = vld [vmem:[#allocation11 + $0x44] ss:$8 sps:$4 sm:$0xff]   ;;  %v1657_v39 = vld [vmem:[#allocation11 + $0x40] ss:$8 sps:$4 sm:$0xff]   ;;  %v1665_v41 = vld [vmem:[#allocation11 + $0x54] ss:$8 sps:$4 sm:$0xff]  }
  0xa7   : > { %860 = vmatprep.subr.bf16.mxu1 %v1632_v17  ;;  %1227 = vmatprep.subr.bf16.mxu0 %v1635_v20  ;;  %v1662_v40 = vld [vmem:[#allocation8 + $0x54] ss:$8 sps:$4 sm:$0xff]   ;;  %v1660_v42 = vld [vmem:[#allocation8 + $0x50] ss:$8 sps:$4 sm:$0xff]   ;;  %v1668_v44 = vld [vmem:[#allocation8 + $0x64] ss:$8 sps:$4 sm:$0xff]   ;;  %v565_v20 = vlaneseq }
  0xa8   : > { %v1663_v43 = vld [vmem:[#allocation11 + $0x50] ss:$8 sps:$4 sm:$0xff]   ;;  %v1671_v45 = vld [vmem:[#allocation11 + $0x64] ss:$8 sps:$4 sm:$0xff]   ;;  %v1669_v47 = vld [vmem:[#allocation11 + $0x60] ss:$8 sps:$4 sm:$0xff]  }
  0xa9   : > { %1454 = vmatmul.mubr.msk.bf16.vlgmr.msra.gmra.mrb[0].mxu1 %vm600_vm1, %v557_v21  ;;  %1495 = vmatmul.mubr.msk.bf16.vlgmr.msra.gmra.mrb[0].mxu0 %vm600_vm1, %v557_v21  ;;  %v1666_v46 = vld [vmem:[#allocation8 + $0x60] ss:$8 sps:$4 sm:$0xff]   ;;  %v1674_v48 = vld [vmem:[#allocation8 + $0x74] ss:$8 sps:$4 sm:$0xff]   ;;  %v1672_v50 = vld [vmem:[#allocation8 + $0x70] ss:$8 sps:$4 sm:$0xff]  }
  0xaa   : > { %861 = vmatpush1.bf16.msra.mxu1 %v1630_v22  ;;  %1228 = vmatpush1.bf16.msra.mxu0 %v1633_v23  ;;  %v1677_v49 = vld [vmem:[#allocation11 + $0x74] ss:$8 sps:$4 sm:$0xff]   ;;  %v1675_v51 = vld [vmem:[#allocation11 + $0x70] ss:$8 sps:$4 sm:$0xff]   ;;  %v1683_v53 = vld [vmem:[#allocation11 + $0x84] ss:$8 sps:$4 sm:$0xff]  }
  0xab   : > { %862 = vmatprep.subr.bf16.mxu1 %v1638_v24  ;;  %1229 = vmatprep.subr.bf16.mxu0 %v1641_v25  ;;  %v1680_v52 = vld [vmem:[#allocation8 + $0x84] ss:$8 sps:$4 sm:$0xff]   ;;  %v1678_v54 = vld [vmem:[#allocation8 + $0x80] ss:$8 sps:$4 sm:$0xff]   ;;  %v1686_v56 = vld [vmem:[#allocation8 + $0x94] ss:$8 sps:$4 sm:$0xff]  }
  0xac   : > { %v1681_v55 = vld [vmem:[#allocation11 + $0x80] ss:$8 sps:$4 sm:$0xff]   ;;  %v1689_v57 = vld [vmem:[#allocation11 + $0x94] ss:$8 sps:$4 sm:$0xff]   ;;  %v1687_v59 = vld [vmem:[#allocation11 + $0x90] ss:$8 sps:$4 sm:$0xff]  }
  0xad   : > { %v1684_v58 = vld [vmem:[#allocation8 + $0x90] ss:$8 sps:$4 sm:$0xff]   ;;  %v1692_v60 = vld [vmem:[#allocation8 + $0xa4] ss:$8 sps:$4 sm:$0xff]   ;;  %v1690_v62 = vld [vmem:[#allocation8 + $0xa0] ss:$8 sps:$4 sm:$0xff]  }
  0xae   : > { %863 = vmatpush1.bf16.msra.mxu1 %v1636_v26  ;;  %1230 = vmatpush1.bf16.msra.mxu0 %v1639_v27  ;;  %v1695_v61 = vld [vmem:[#allocation11 + $0xa4] ss:$8 sps:$4 sm:$0xff]   ;;  %v1693_v63 = vld [vmem:[#allocation11 + $0xa0] ss:$8 sps:$4 sm:$0xff]   ;;  %v1701_v1 = vld [vmem:[#allocation11 + $0xb4] ss:$8 sps:$4 sm:$0xff]  }
  0xaf   : > { %864 = vmatprep.subr.bf16.mxu1 %v1644_v28  ;;  %1231 = vmatprep.subr.bf16.mxu0 %v1647_v29  ;;  %v1698_v0 = vld [vmem:[#allocation8 + $0xb4] ss:$8 sps:$4 sm:$0xff]   ;;  %v1696_v2 = vld [vmem:[#allocation8 + $0xb0] ss:$8 sps:$4 sm:$0xff]   ;;  %v1704_v4 = vld [vmem:[#allocation8 + $0xc4] ss:$8 sps:$4 sm:$0xff]  }
  0xb0   : > { %v1699_v3 = vld [vmem:[#allocation11 + $0xb0] ss:$8 sps:$4 sm:$0xff]   ;;  %v1707_v5 = vld [vmem:[#allocation11 + $0xc4] ss:$8 sps:$4 sm:$0xff]   ;;  %v1705_v7 = vld [vmem:[#allocation11 + $0xc0] ss:$8 sps:$4 sm:$0xff]  }
  0xb1   : > { %v1702_v6 = vld [vmem:[#allocation8 + $0xc0] ss:$8 sps:$4 sm:$0xff]   ;;  %v1710_v8 = vld [vmem:[#allocation8 + $0xd4] ss:$8 sps:$4 sm:$0xff]   ;;  %v1708_v10 = vld [vmem:[#allocation8 + $0xd0] ss:$8 sps:$4 sm:$0xff]  }
  0xb2   : > { %865 = vmatpush1.bf16.msra.mxu1 %v1642_v30  ;;  %1232 = vmatpush1.bf16.msra.mxu0 %v1645_v31  ;;  %v1713_v9 = vld [vmem:[#allocation11 + $0xd4] ss:$8 sps:$4 sm:$0xff]   ;;  %v1711_v11 = vld [vmem:[#allocation11 + $0xd0] ss:$8 sps:$4 sm:$0xff]   ;;  %v1719_v13 = vld [vmem:[#allocation11 + $0xe4] ss:$8 sps:$4 sm:$0xff]  }
  0xb3   : > { %866 = vmatprep.subr.bf16.mxu1 %v1650_v32  ;;  %1233 = vmatprep.subr.bf16.mxu0 %v1653_v33  ;;  %v1716_v12 = vld [vmem:[#allocation8 + $0xe4] ss:$8 sps:$4 sm:$0xff]   ;;  %v1714_v14 = vld [vmem:[#allocation8 + $0xe0] ss:$8 sps:$4 sm:$0xff]   ;;  %v1722_v16 = vld [vmem:[#allocation8 + $0xf4] ss:$8 sps:$4 sm:$0xff]  }
  0xb4   : > { %v1717_v15 = vld [vmem:[#allocation11 + $0xe0] ss:$8 sps:$4 sm:$0xff]   ;;  %v1725_v17 = vld [vmem:[#allocation11 + $0xf4] ss:$8 sps:$4 sm:$0xff]   ;;  %v1723_v19 = vld [vmem:[#allocation11 + $0xf0] ss:$8 sps:$4 sm:$0xff]  }
  0xb5   : > { %v1720_v18 = vld [vmem:[#allocation8 + $0xf0] ss:$8 sps:$4 sm:$0xff]   ;;  %v566_v21 = vshrl.u32 %v565_v20, 7  ;;  %v563_v23 = vld [vmem:[%s2270_s2] sm:$0x3]  ;;  %s2309_s21 = smov (!%p548_p6, %s2022_s21), 1 }
  0xb6   : > { %867 = vmatpush1.bf16.msra.mxu1 %v1648_v34  ;;  %1234 = vmatpush1.bf16.msra.mxu0 %v1651_v35  ;;  %v935_v24 = vld [vmem:[%s2276_s8] sm:$0x3]  ;;  %s1445_s27 = sshll.u32 %s2309_s21, 3  ;;  %s2302_s22 = sld [smem:[#allocation17_spill]]  ;;  %vm928_vm2 = vcmask 7168  }
  0xb7   : > { %868 = vmatprep.subr.bf16.mxu1 %v1656_v36  ;;  %1235 = vmatprep.subr.bf16.mxu0 %v1659_v37  ;;  %v567_v22 = vsub.s32 0, %v566_v21  ;;  %v571_v25 = vsub.s32 1, %v566_v21  ;;  %v1487_v20 = vld [vmem:[#allocation2] ss:$0 sm:$0xff]  ;;  %s2303_s24 = sld [smem:[#allocation18_spill]] }
  0xb9   : > { %v568_v26 = vrot.slane %v563_v23, %v567_v22  ;;  %v940_v27 = vrot.slane %v935_v24, %v567_v22  ;;  %v572_v28 = vrot.slane %v563_v23, %v571_v25  ;;  %v944_v29 = vrot.slane %v935_v24, %v571_v25  ;;  %v1528_v23 = vld [vmem:[#allocation3] ss:$0 sm:$0xff] }
  0xba   : > { %869 = vmatpush1.bf16.msra.mxu1 %v1654_v38  ;;  %1236 = vmatpush1.bf16.msra.mxu0 %v1657_v39 }
  0xbb   : > { %870 = vmatprep.subr.bf16.mxu1 %v1662_v40  ;;  %1237 = vmatprep.subr.bf16.mxu0 %v1665_v41 }
  0xbc   : > { %s551_s15 = scalar_lea.vmem %s2302_s22, %s1445_s27 }
  0xbd   : > { %s555_s20 = scalar_lea.vmem %s2303_s24, %s1445_s27 }
  0xbe   : > { %871 = vmatpush1.bf16.msra.mxu1 %v1660_v42  ;;  %1238 = vmatpush1.bf16.msra.mxu0 %v1663_v43 }
  0xbf   : > { %872 = vmatprep.subr.bf16.mxu1 %v1668_v44  ;;  %1239 = vmatprep.subr.bf16.mxu0 %v1671_v45 }
  0xc2   : > { %873 = vmatpush1.bf16.msra.mxu1 %v1666_v46  ;;  %1240 = vmatpush1.bf16.msra.mxu0 %v1669_v47 }
  0xc3   : > { %874 = vmatprep.subr.bf16.mxu1 %v1674_v48  ;;  %1241 = vmatprep.subr.bf16.mxu0 %v1677_v49 }
  0xc6   : > { %875 = vmatpush1.bf16.msra.mxu1 %v1672_v50  ;;  %1242 = vmatpush1.bf16.msra.mxu0 %v1675_v51  ;;  %v688_v50 = vld [vmem:[%s2272_s4] sm:$0x3] }
  0xc7   : > { %876 = vmatprep.subr.bf16.mxu1 %v1680_v52  ;;  %1243 = vmatprep.subr.bf16.mxu0 %v1683_v53  ;;  %v1055_v51 = vld [vmem:[%s2278_s10] sm:$0x3]  ;;  %v693_v52 = vrot.slane %v688_v50, %v567_v22 }
  0xc8   : > { %v1060_v53 = vrot.slane %v1055_v51, %v567_v22 }
  0xca   : > { %877 = vmatpush1.bf16.msra.mxu1 %v1678_v54  ;;  %1244 = vmatpush1.bf16.msra.mxu0 %v1681_v55  ;;  %v1270_v54 = vld [vmem:[%s2300_s30] sm:$0x3]  ;;  %v697_v55 = vrot.slane %v688_v50, %v571_v25 }
  0xcb   : > { %878 = vmatprep.subr.bf16.mxu1 %v1686_v56  ;;  %1245 = vmatprep.subr.bf16.mxu0 %v1689_v57  ;;  %v1064_v56 = vrot.slane %v1055_v51, %v571_v25  ;;  %v903_v57 = vld [vmem:[%s2301_s17] sm:$0x3] }
  0xce   : > { %879 = vmatpush1.bf16.msra.mxu1 %v1684_v58  ;;  %1246 = vmatpush1.bf16.msra.mxu0 %v1687_v59 }
  0xcf   : > { %880 = vmatprep.subr.bf16.mxu1 %v1692_v60  ;;  %1247 = vmatprep.subr.bf16.mxu0 %v1695_v61 }
  0xd2   : > { %881 = vmatpush1.bf16.msra.mxu1 %v1690_v62  ;;  %1248 = vmatpush1.bf16.msra.mxu0 %v1693_v63  ;;  %v1275_v62 = vrot.slane %v1270_v54, %v567_v22 }
  0xd3   : > { %882 = vmatprep.subr.bf16.mxu1 %v1698_v0  ;;  %1249 = vmatprep.subr.bf16.mxu0 %v1701_v1  ;;  %v908_v1 = vrot.slane %v903_v57, %v567_v22 }
  0xd6   : > { %883 = vmatpush1.bf16.msra.mxu1 %v1696_v2  ;;  %1250 = vmatpush1.bf16.msra.mxu0 %v1699_v3 }
  0xd7   : > { %884 = vmatprep.subr.bf16.mxu1 %v1704_v4  ;;  %1251 = vmatprep.subr.bf16.mxu0 %v1707_v5  ;;  %v1279_v4 = vrot.slane %v1270_v54, %v571_v25 }
  0xda   : > { %885 = vmatpush1.bf16.msra.mxu1 %v1702_v6  ;;  %1252 = vmatpush1.bf16.msra.mxu0 %v1705_v7  ;;  %v912_v7 = vrot.slane %v903_v57, %v571_v25 }
  0xdb   : > { %886 = vmatprep.subr.bf16.mxu1 %v1710_v8  ;;  %1253 = vmatprep.subr.bf16.mxu0 %v1713_v9 }
  0xde   : > { %887 = vmatpush1.bf16.msra.mxu1 %v1708_v10  ;;  %1254 = vmatpush1.bf16.msra.mxu0 %v1711_v11 }
  0xdf   : > { %888 = vmatprep.subr.bf16.mxu1 %v1716_v12  ;;  %1255 = vmatprep.subr.bf16.mxu0 %v1719_v13 }
  0xe2   : > { %889 = vmatpush1.bf16.msra.mxu1 %v1714_v14  ;;  %1256 = vmatpush1.bf16.msra.mxu0 %v1717_v15 }
  0xe3   : > { %890 = vmatprep.subr.bf16.mxu1 %v1722_v16  ;;  %1257 = vmatprep.subr.bf16.mxu0 %v1725_v17 }
  0xe6   : > { %891 = vmatpush1.bf16.msra.mxu1 %v1720_v18  ;;  %1258 = vmatpush1.bf16.msra.mxu0 %v1723_v19 }
 0x17c   : > { %v645_v30 = vpop.f32.mrb[0].mxu1  ;;  %v1012_v31 = vpop.f32.mrb[0].mxu0 }
 0x17d   : > { %v646_v32 = vadd.f32 %v645_v30, %v568_v26  ;;  %v1013_v33 = vadd.f32 %v1012_v31, %v940_v27  ;;  %v647_v34 = vpop.f32.mrb[1].mxu1  ;;  %v1014_v35 = vpop.f32.mrb[1].mxu0 }
 0x17e   : > { %v648_v36 = vadd.f32 %v647_v34, %v572_v28  ;;  %v1015_v37 = vadd.f32 %v1014_v35, %v944_v29  ;;  %v649_v38 = vpop.f32.mrb[2].mxu1  ;;  %v1016_v39 = vpop.f32.mrb[2].mxu0 }
 0x17f   : > { %v652_v40 = vmax.f32 %v646_v32, 0.0  ;;  %v1019_v41 = vmax.f32 %v1013_v33, 0.0  ;;  %v650_v42 = vpop.f32.mrb[3].mxu1  ;;  %v1017_v43 = vpop.f32.mrb[3].mxu0 }
 0x180   : > { %v653_v44 = vmax.f32 %v648_v36, 0.0  ;;  %v1020_v45 = vmax.f32 %v1015_v37, 0.0 }
 0x181   : > { %v1021_v46 = vpack.c.bf16 %v1019_v41, %v1019_v41  ;;  %v654_v49 = vpack.c.bf16 %v652_v40, %v652_v40 }
 0x182   : > { %v655_v47 = vpack.c.bf16 %v653_v44, %v653_v44  ;;  %v1022_v48 = vpack.c.bf16 %v1020_v45, %v1020_v45 }
 0x184   : > { %892 = vmatprep.mubr.bf16.mxu1 %v655_v47  ;;  %1259 = vmatprep.mubr.bf16.mxu0 %v1022_v48 }
 0x185   : > { %893 = vmatmul.mubr.bf16.vlgmr.msra.gmra.mrb[4].mxu1 %v654_v49  ;;  %1260 = vmatmul.mubr.bf16.vlgmr.msra.gmra.mrb[4].mxu0 %v1021_v46 }
 0x258   : > { %v894_v58 = vpop.f32.mrb[4].mxu1  ;;  %v1261_v59 = vpop.f32.mrb[4].mxu0 }
 0x259   : > { %v895_v60 = vadd.f32 %v894_v58, %v693_v52  ;;  %v1262_v61 = vadd.f32 %v1261_v59, %v1060_v53  ;;  %v896_v63 = vpop.f32.mrb[5].mxu1  ;;  %v1263_v0 = vpop.f32.mrb[5].mxu0 }
 0x25a   : > { %v897_v2 = vadd.f32 %v896_v63, %v697_v55  ;;  %v1264_v3 = vadd.f32 %v1263_v0, %v1064_v56  ;;  %v898_v5 = vpop.f32.mrb[6].mxu1  ;;  %v1265_v6 = vpop.f32.mrb[6].mxu0 }
 0x25b   : > { %v901_v8 = vmax.f32 %v895_v60, 0.0  ;;  %v1268_v9 = vmax.f32 %v1262_v61, 0.0  ;;  %v899_v10 = vpop.f32.mrb[7].mxu1  ;;  %v1266_v11 = vpop.f32.mrb[7].mxu0 }
 0x25c   : > { %v902_v12 = vmax.f32 %v897_v2, 0.0  ;;  %v1269_v13 = vmax.f32 %v1264_v3, 0.0 }
 0x25d   : > { %v1282_v14 = vmul.f32 %v1275_v62, %v1268_v9  ;;  %v915_v15 = vmul.f32 %v908_v1, %v901_v8 }
 0x25e   : > { %v1283_v16 = vmul.f32 %v1279_v4, %v1269_v13  ;;  %v916_v17 = vmul.f32 %v912_v7, %v902_v12 }
 0x260   : > { %v917_v18 = vadd.f32 %v916_v17, %v915_v15  ;;  %v1284_v19 = vadd.f32 %v1283_v16, %v1282_v14 }
 0x262   : > { %918 = vadd.xlane.f32.xlu0 %v917_v18 }
 0x266   : > { %1285 = vadd.xlane.f32.xlu0 %v1284_v19 }
 0x2ef   : > { %v919_v21 = vpop.xlane.xlu0 %918 }
 0x2f0   : > { %v927_v22 = vadd.f32 %v1487_v20, %v919_v21 }
 0x2f2   : > { %929 = vst.msk [vmem:[%s551_s15] sm:$0xff] %vm928_vm2, %v927_v22 }
 0x2f3   : > { %v1286_v24 = vpop.xlane.xlu0 %1285 }
 0x2f4   : > { %v1294_v25 = vadd.f32 %v1528_v23, %v1286_v24 }
 0x2f6   : > { %1295 = vst.msk [vmem:[%s555_s20] sm:$0xff] %vm928_vm2, %v1294_v25 }
 0x2f7 PF: > { %p31_p0 = scmp.ge.s32.totalorder %s2151_s25, 4   ;;  %s2304_s17 = smov %s1902_s18 }
 0x2f8   : > { %s2305_s18 = smov %s1906_s19  ;;  %s2306_s19 = smov %s2163_s14 }
 0x2f9   : > { %s2307_s20 = smov %s2151_s25  ;;  %33 = sbr.rel (!%p31_p0) target bundleno = 10 (0xa), region = 140 }
 0x300   :  { %1329 = vsyncpa [#allocation5], 1 }
 0x301   :  { %1331 = vsyncpa [#allocation5 + $0x1], 1 }
 0x302   :  { %1332 = vsyncpa [#allocation7], 1 }
 0x303   :  { %1333 = vsyncpa [#allocation10], 1 }

</bundles_post_ra>
